<compile_context>
chip_gen: v7x
topology: tpu7x:2x2x1
jax: 0.10.0
libtpu: 0.0.40
codegen_flags: <defaults>
</compile_context>

<pallas_src>
import math

import jax
import jax.numpy as jnp
from jax import lax
from jax.experimental import pallas as pl
from jax.experimental.pallas import tpu as pltpu

_INV_SQRT2 = 1.0 / math.sqrt(2.0)


def _cdiv(a, b):
    return (a + b - 1) // b


def _round_up(a, b):
    return _cdiv(a, b) * b


def _block_kernel(x_ref, w_ref, b_ref, o_ref):
    # x_ref: (tm, size)    tile of input rows
    # w_ref: (size, size)  full weight in PyTorch (out, in) layout (resident)
    # b_ref: (1, size)     bias row
    # o_ref: (tm, size)    output tile
    x = x_ref[...]
    # h = x @ W^T done natively by the MXU (contract the "in" dims of both).
    h = lax.dot_general(
        x, w_ref[...],
        dimension_numbers=(((1,), (1,)), ((), ())),
        preferred_element_type=jnp.float32,
    )
    h = h + b_ref[...].astype(jnp.float32)
    # Exact (erf) GELU to match torch.nn.GELU() default numerics.
    g = 0.5 * h * (1.0 + lax.erf(h * _INV_SQRT2))
    o_ref[...] = (x.astype(jnp.float32) + g).astype(o_ref.dtype)


def block_forward(x, weight, bias, *, tm=None):
    """Block forward: x + GELU(x @ weight.T + bias).

    x: (..., size); weight: (size, size) in PyTorch (out, in) layout; bias: (size,).
    """
    size = weight.shape[0]
    orig_shape = x.shape
    x2d = x.reshape(-1, size)
    n = x2d.shape[0]

    # Pick a large row tile (amortizes per-step pipeline overhead and fills the
    # MXU); split evenly into ~512-row chunks and round to the sublane multiple.
    if tm is None:
        num_tiles = max(1, _cdiv(n, 512))
        tm = _round_up(_cdiv(n, num_tiles), 8)

    n_pad = _round_up(n, tm)
    if n_pad != n:
        x2d = jnp.pad(x2d, ((0, n_pad - n), (0, 0)))

    b2d = bias.reshape(1, size)
    grid = (n_pad // tm,)

    out = pl.pallas_call(
        _block_kernel,
        out_shape=jax.ShapeDtypeStruct((n_pad, size), x.dtype),
        grid_spec=pltpu.PrefetchScalarGridSpec(
            num_scalar_prefetch=0,
            grid=grid,
            in_specs=[
                pl.BlockSpec((tm, size), lambda i: (i, 0)),       # x tile
                pl.BlockSpec((size, size), lambda i: (0, 0)),     # W (out, in), resident
                pl.BlockSpec((1, size), lambda i: (0, 0)),        # bias
            ],
            out_specs=pl.BlockSpec((tm, size), lambda i: (i, 0)),
        ),
        compiler_params=pltpu.CompilerParams(
            dimension_semantics=("parallel",),
        ),
    )(x2d, weight, b2d)

    if n_pad != n:
        out = out[:n]
    return out.reshape(orig_shape)


def _reference(x, weight, bias):
    h = x @ weight.T + bias
    g = 0.5 * h * (1.0 + lax.erf(h / jnp.sqrt(2.0)))
    return x + g


if __name__ == "__main__":
    size = 128           # feature dim (lane-aligned)
    lead = (2, 10)       # leading dims -> n = 20 rows (exercises padding path)
    key = jax.random.PRNGKey(0)
    kx, kw, kb = jax.random.split(key, 3)

    # Deterministic init mimicking nn.Linear default (uniform +-1/sqrt(size))
    bound = 1.0 / math.sqrt(size)
    x = jax.random.normal(kx, lead + (size,), dtype=jnp.float32)
    weight = jax.random.uniform(kw, (size, size), jnp.float32, -bound, bound)
    bias = jax.random.uniform(kb, (size,), jnp.float32, -bound, bound)

    out = block_forward(x, weight, bias)
    out = jax.block_until_ready(out)

    ref = _reference(x, weight, bias)
    assert out.shape == x.shape and out.dtype == x.dtype
    assert jnp.allclose(out, ref, atol=1e-5, rtol=1e-5), "mismatch vs reference"

    print("KERNEL_OK")
</pallas_src>

<mosaic_0001>
module attributes {stable_mosaic.version = 11 : i64} {
  func.func @_block_kernel(%arg0: i32, %arg1: memref<24x128xf32, #tpu.memory_space<vmem>>, %arg2: memref<128x128xf32, #tpu.memory_space<vmem>>, %arg3: memref<1x128xf32, #tpu.memory_space<vmem>>, %arg4: memref<24x128xf32, #tpu.memory_space<vmem>>) attributes {dimension_semantics = [#tpu.dimension_semantics<parallel>], iteration_bounds = array<i64: 1>, scalar_prefetch = 0 : i64, scratch_operands = 0 : i64, tpu.core_type = #tpu.core_type<tc>, window_params = [{transform_indices = @transform_0, window_bounds = array<i64: 24, 128>}, {pipeline_mode = #tpu.pipeline_mode<synchronous>, transform_indices = @transform_1, window_bounds = array<i64: 128, 128>}, {pipeline_mode = #tpu.pipeline_mode<synchronous>, transform_indices = @transform_2, window_bounds = array<i64: 1, 128>}, {transform_indices = @transform_3, window_bounds = array<i64: 24, 128>}]} {
    %c0 = arith.constant 0 : index
    %c0_0 = arith.constant 0 : index
    %0 = vector.load %arg1[%c0, %c0_0] : memref<24x128xf32, #tpu.memory_space<vmem>>, vector<24x128xf32>
    %c0_1 = arith.constant 0 : index
    %c0_2 = arith.constant 0 : index
    %1 = vector.load %arg2[%c0_1, %c0_2] : memref<128x128xf32, #tpu.memory_space<vmem>>, vector<128x128xf32>
    %cst = arith.constant dense<0.000000e+00> : vector<24x128xf32>
    %2 = tpu.matmul %0, %1, %cst {dimension_numbers = #tpu.dot_dimension_numbers<[1], [1], [0], [0], [0, 0, 1, 0], [], []>} : vector<24x128xf32>, vector<128x128xf32>, vector<24x128xf32> -> vector<24x128xf32>
    %c0_3 = arith.constant 0 : index
    %c0_4 = arith.constant 0 : index
    %3 = vector.load %arg3[%c0_3, %c0_4] : memref<1x128xf32, #tpu.memory_space<vmem>>, vector<1x128xf32>
    %4 = vector.broadcast %3 : vector<1x128xf32> to vector<24x128xf32>
    %5 = arith.addf %2, %4 : vector<24x128xf32>
    %cst_5 = arith.constant 5.000000e-01 : f32
    %6 = vector.broadcast %cst_5 : f32 to vector<24x128xf32>
    %7 = arith.mulf %6, %5 : vector<24x128xf32>
    %cst_6 = arith.constant 0.707106769 : f32
    %8 = vector.broadcast %cst_6 : f32 to vector<24x128xf32>
    %9 = arith.mulf %5, %8 : vector<24x128xf32>
    %10 = math.erf %9 : vector<24x128xf32>
    %cst_7 = arith.constant 1.000000e+00 : f32
    %11 = vector.broadcast %cst_7 : f32 to vector<24x128xf32>
    %12 = arith.addf %11, %10 : vector<24x128xf32>
    %13 = arith.mulf %7, %12 : vector<24x128xf32>
    %14 = arith.addf %0, %13 : vector<24x128xf32>
    %c0_8 = arith.constant 0 : index
    %c0_9 = arith.constant 0 : index
    %15 = vector.load %arg4[%c0_8, %c0_9] : memref<24x128xf32, #tpu.memory_space<vmem>>, vector<24x128xf32>
    tpu.vector_store %arg4[%c0_8, %c0_9], %14 {strides = array<i32>} : memref<24x128xf32, #tpu.memory_space<vmem>>, vector<24x128xf32>,
    return
  }
  func.func @transform_0(%arg0: i32) -> (i32, i32) {
    %c0_i32 = arith.constant 0 : i32
    %c0_i32_0 = arith.constant 0 : i32
    return %arg0, %c0_i32 : i32, i32
  }
  func.func @transform_1(%arg0: i32) -> (i32, i32) {
    %c0_i32 = arith.constant 0 : i32
    %c0_i32_0 = arith.constant 0 : i32
    %c0_i32_1 = arith.constant 0 : i32
    return %c0_i32, %c0_i32_0 : i32, i32
  }
  func.func @transform_2(%arg0: i32) -> (i32, i32) {
    %c0_i32 = arith.constant 0 : i32
    %c0_i32_0 = arith.constant 0 : i32
    %c0_i32_1 = arith.constant 0 : i32
    return %c0_i32, %c0_i32_0 : i32, i32
  }
  func.func @transform_3(%arg0: i32) -> (i32, i32) {
    %c0_i32 = arith.constant 0 : i32
    %c0_i32_0 = arith.constant 0 : i32
    return %arg0, %c0_i32 : i32, i32
  }
}

</mosaic_0001>

<bundles_post_ra>
// kernel: tpu_custom_call.1
= control target key start
LH: loop header
LB: loop body
LE: loop exit
PB: predicated region body
PF: predicated region fallthrough
CT: control target
= control target key end

     0   :  { %8 = vsyncpa [#allocation3], 0  ;;  %s454_s0 = inlined_call_operand.hbm [shape: f32[24,128], index: 0, kind: input, shape index: {}]   ;;  %s455_s1 = inlined_call_operand.hbm [shape: f32[128,128], index: 1, kind: input, shape index: {}]   ;;  %s456_s2 = inlined_call_operand.vmem [shape: f32[1,128], index: 2, kind: input, shape index: {}]   ;;  %s457_s3 = inlined_call_operand.hbm [shape: f32[24,128], index: 3, kind: output, shape index: {}]  }
   0x1   :  { %9 = vsyncpa [#allocation6], 0 }
   0x2   :  { %10 = vsyncpa [#allocation4], 0  ;;  %s375_s12 = smov [#allocation2]   ;;  %s303_s16 = scalar_lea.hbm %s454_s0, 384 }
   0x3   :  { %s16_s13 = sshll.u32 %s375_s12, 4  ;;  %p304_p0 = scmp.ne.s32.totalorder %s454_s0, %s303_s16  ;;  %s17_s13 = int_to_ptr.vmem [resolvable:$true] %s16_s13 }
   0x4   :  { %p307_p1 = scmp.lt.u32.totalorder %s303_s16, %s454_s0 }
   0x6   :  { %p309_p2 = pnand %p307_p1, %p304_p0 }
   0x8   :  { %312 = shalt.err (!%p309_p2)
}
   0x9   :  { %s313_s21 = scalar_lea.vmem %s17_s13, 384  ;;  %p318_p4 = scmp.lt.s32.totalorder %s17_s13, %s17_s13 }
   0xa   :  { %p314_p3 = scmp.ne.s32.totalorder %s17_s13, %s313_s21  ;;  %p319_p5 = scmp.lt.s32.totalorder %s313_s21, %s313_s21 }
   0xc   :  { %p320_p6 = por %p319_p5, %p318_p4 }
   0xe   :  { %p321_p7 = pnand %p320_p6, %p314_p3 }
  0x10   :  { %324 = shalt.err (!%p321_p7)
}
  0x11   :  { %s376_s22 = smov 128   ;;  %s377_s23 = smov 8  }
  0x12   :  { %22 = dma.hbm_to_vmem [thread:$0]  %s454_s0, 384, %s17_s13, [#allocation3], %s376_s22, %s376_s22, %s377_s23  }
  0x13   :  { %s378_s26 = smov [#allocation5]   ;;  %s325_s30 = scalar_lea.hbm %s455_s1, 2048 }
  0x14   :  { %s28_s27 = sshll.u32 %s378_s26, 4  ;;  %p326_p8 = scmp.ne.s32.totalorder %s455_s1, %s325_s30  ;;  %s29_s27 = int_to_ptr.vmem [resolvable:$true] %s28_s27 }
  0x15   :  { %p329_p9 = scmp.lt.u32.totalorder %s325_s30, %s455_s1 }
  0x17   :  { %p331_p10 = pnand %p329_p9, %p326_p8 }
  0x19   :  { %334 = shalt.err (!%p331_p10)
}
  0x1a   :  { %s335_s8 = scalar_lea.vmem %s29_s27, 2048  ;;  %p340_p12 = scmp.lt.s32.totalorder %s29_s27, %s29_s27 }
  0x1b   :  { %p336_p11 = scmp.ne.s32.totalorder %s29_s27, %s335_s8  ;;  %p341_p13 = scmp.lt.s32.totalorder %s335_s8, %s335_s8 }
  0x1d   :  { %p342_p0 = por %p341_p13, %p340_p12 }
  0x1f   :  { %p343_p1 = pnand %p342_p0, %p336_p11 }
  0x21   :  { %346 = shalt.err (!%p343_p1)
}
  0x22   :  { %34 = dma.hbm_to_vmem [thread:$0]  %s455_s1, 2048, %s29_s27, [#allocation6], %s376_s22, %s376_s22, %s377_s23  }
  0x23   :  { %369 = dma.done.wait [#allocation3], 384  }
  0x24   :  { %370 = vsyncadd [#allocation3], 4294966912 }
  0x25   :  { %371 = dma.done.wait [#allocation6], 2048  }
  0x26   :  { %372 = vsyncadd [#allocation6], 4294965248  ;;  %v379_v0 = vmov 0.0|0.0   ;;  %vm380_vm0 = vmmov 0   ;;  %v381_v1 = vmov 0.0   ;;  %v46_v2 = vld [vmem:[#allocation5] sm:$0xff] }
  0x27   :  { %249 = vmatprep.subr.bf16.mxu0 %v379_v0  ;;  %273 = vmatprep.subr.bf16.mxu1 %v379_v0  ;;  %v47_v3 = vld [vmem:[#allocation5 + $0x8] sm:$0xff]  ;;  %v48_v5 = vld [vmem:[#allocation5 + $0x10] sm:$0xff]  ;;  %v49_v6 = vld [vmem:[#allocation5 + $0x18] sm:$0xff] }
  0x28   :  { %240 = vmatprep.mubr.msk.f32.mxu0 %vm380_vm0, %v381_v1  ;;  %243 = vmatprep.mubr.msk.f32.mxu1 %vm380_vm0, %v381_v1  ;;  %v250_v4 = vpack.c.bf16 %v47_v3, %v46_v2  ;;  %v253_v7 = vpack.c.bf16 %v49_v6, %v48_v5  ;;  %v50_v8 = vld [vmem:[#allocation5 + $0x20] sm:$0xff]  ;;  %v51_v9 = vld [vmem:[#allocation5 + $0x28] sm:$0xff]  ;;  %v52_v11 = vld [vmem:[#allocation5 + $0x30] sm:$0xff] }
  0x29   :  { %v256_v10 = vpack.c.bf16 %v51_v9, %v50_v8  ;;  %v53_v12 = vld [vmem:[#allocation5 + $0x38] sm:$0xff]  ;;  %v54_v14 = vld [vmem:[#allocation5 + $0x40] sm:$0xff]  ;;  %v55_v15 = vld [vmem:[#allocation5 + $0x48] sm:$0xff] }
  0x2a   :  { %251 = vmatpush3.bf16.xpose.msra.mxu0 %v250_v4  ;;  %281 = vmatpush3.bf16.xpose.msra.mxu1 %v250_v4  ;;  %v259_v13 = vpack.c.bf16 %v53_v12, %v52_v11  ;;  %v262_v16 = vpack.c.bf16 %v55_v15, %v54_v14  ;;  %v56_v17 = vld [vmem:[#allocation5 + $0x50] sm:$0xff]  ;;  %v57_v18 = vld [vmem:[#allocation5 + $0x58] sm:$0xff]  ;;  %v58_v20 = vld [vmem:[#allocation5 + $0x60] sm:$0xff] }
  0x2b   :  { %252 = vmatprep.subr.bf16.mxu0 %v379_v0  ;;  %274 = vmatprep.subr.bf16.mxu1 %v379_v0  ;;  %v265_v19 = vpack.c.bf16 %v57_v18, %v56_v17  ;;  %v59_v21 = vld [vmem:[#allocation5 + $0x68] sm:$0xff]  ;;  %v60_v23 = vld [vmem:[#allocation5 + $0x70] sm:$0xff]  ;;  %v61_v24 = vld [vmem:[#allocation5 + $0x78] sm:$0xff] }
  0x2c   :  { %v268_v22 = vpack.c.bf16 %v59_v21, %v58_v20  ;;  %v271_v25 = vpack.c.bf16 %v61_v24, %v60_v23  ;;  %v43_v26 = vld [vmem:[#allocation2] sm:$0xff]  ;;  %v44_v27 = vld [vmem:[#allocation2 + $0x8] sm:$0xff]  ;;  %v45_v28 = vld [vmem:[#allocation2 + $0x10] sm:$0xff] }
  0x2d   :  { %v188_v29 = vld [vmem:[%s456_s2] ss:$0 sm:$0xff]  ;;  %s382_s2 = smov [#allocation7]  }
  0x2e   :  { %s175_s11 = sshll.u32 %s382_s2, 4  ;;  %s176_s11 = int_to_ptr.vmem [resolvable:$true] %s175_s11 }
  0x2f   :  { %s347_s12 = scalar_lea.vmem %s176_s11, 384  ;;  %p352_p3 = scmp.lt.s32.totalorder %s176_s11, %s176_s11 }
  0x30   :  { %p348_p2 = scmp.ne.s32.totalorder %s176_s11, %s347_s12  ;;  %p353_p4 = scmp.lt.s32.totalorder %s347_s12, %s347_s12 }
  0x32   :  { %254 = vmatpush3.bf16.xpose.msra.mxu0 %v253_v7  ;;  %282 = vmatpush3.bf16.xpose.msra.mxu1 %v253_v7  ;;  %p354_p5 = por %p353_p4, %p352_p3 }
  0x33   :  { %255 = vmatprep.subr.bf16.mxu0 %v379_v0  ;;  %275 = vmatprep.subr.bf16.mxu1 %v379_v0 }
  0x34   :  { %p355_p6 = pnand %p354_p5, %p348_p2 }
  0x3a   :  { %257 = vmatpush3.bf16.xpose.msra.mxu0 %v256_v10  ;;  %283 = vmatpush3.bf16.xpose.msra.mxu1 %v256_v10 }
  0x3b   :  { %258 = vmatprep.subr.bf16.mxu0 %v379_v0  ;;  %276 = vmatprep.subr.bf16.mxu1 %v379_v0 }
  0x42   :  { %260 = vmatpush3.bf16.xpose.msra.mxu0 %v259_v13  ;;  %284 = vmatpush3.bf16.xpose.msra.mxu1 %v259_v13 }
  0x43   :  { %261 = vmatprep.subr.bf16.mxu0 %v379_v0  ;;  %277 = vmatprep.subr.bf16.mxu1 %v379_v0 }
  0x4a   :  { %263 = vmatpush3.bf16.xpose.msra.mxu0 %v262_v16  ;;  %285 = vmatpush3.bf16.xpose.msra.mxu1 %v262_v16 }
  0x4b   :  { %264 = vmatprep.subr.bf16.mxu0 %v379_v0  ;;  %278 = vmatprep.subr.bf16.mxu1 %v379_v0 }
  0x52   :  { %266 = vmatpush3.bf16.xpose.msra.mxu0 %v265_v19  ;;  %286 = vmatpush3.bf16.xpose.msra.mxu1 %v265_v19 }
  0x53   :  { %267 = vmatprep.subr.bf16.mxu0 %v379_v0  ;;  %279 = vmatprep.subr.bf16.mxu1 %v379_v0 }
  0x5a   :  { %269 = vmatpush3.bf16.xpose.msra.mxu0 %v268_v22  ;;  %287 = vmatpush3.bf16.xpose.msra.mxu1 %v268_v22 }
  0x5b   :  { %270 = vmatprep.subr.bf16.mxu0 %v379_v0  ;;  %280 = vmatprep.subr.bf16.mxu1 %v379_v0 }
  0x62   :  { %272 = vmatpush3.bf16.xpose.msra.mxu0 %v271_v25  ;;  %288 = vmatpush3.bf16.xpose.msra.mxu1 %v271_v25 }
  0x69   :  { %241 = vmatmul.mubr.f32.vlgmr.msra.gmra.mrb[0].mxu0 %v43_v26  ;;  %244 = vmatmul.mubr.f32.vlgmr.msra.gmra.mrb[0].mxu1 %v44_v27 }
  0x6a   :  { %246 = vmatprep.mubr.msk.f32.mxu1 %vm380_vm0, %v381_v1 }
  0x6d   :  { %247 = vmatmul.mubr.f32.gmra.mrb[2].mxu1 %v45_v28 }
 0x13c   :  { %v135_v30 = vpop.f32.mrb[0].mxu0  ;;  %v140_v31 = vpop.f32.mrb[0].mxu1 }
 0x13d   :  { %v136_v32 = vadd.f32 %v188_v29, %v135_v30  ;;  %v141_v33 = vadd.f32 %v188_v29, %v140_v31  ;;  %v245_v34 = vpop.f32.mrb[1].mxu1  ;;  %v242_v35 = vpop.f32.mrb[1].mxu0 }
 0x13f   :  { %v152_v36 = vmul.f32 0.70710677, %v136_v32  ;;  %v153_v37 = vmul.f32 0.70710677, %v141_v33  ;;  %v149_v44 = vmul.f32 0.5, %v136_v32  ;;  %v150_v46 = vmul.f32 0.5, %v141_v33 }
 0x140   :  { %v145_v38 = vpop.f32.mrb[2].mxu1 }
 0x141   :  { %297 = verf.f32 %v152_v36  ;;  %v146_v39 = vadd.f32 %v188_v29, %v145_v38  ;;  %v248_v40 = vpop.f32.mrb[3].mxu1 }
 0x142   :  { %299 = verf.f32 %v153_v37 }
 0x143   :  { %v154_v41 = vmul.f32 0.70710677, %v146_v39  ;;  %v151_v52 = vmul.f32 0.5, %v146_v39 }
 0x145   :  { %301 = verf.f32 %v154_v41 }
 0x14b   :  { %v298_v42 = vpop.eup %297 }
 0x14c   :  { %v300_v43 = vpop.eup %299  ;;  %v158_v45 = vadd.f32 1.0, %v298_v42 }
 0x14d   :  { %v159_v47 = vadd.f32 1.0, %v300_v43 }
 0x14e   :  { %v161_v48 = vmul.f32 %v158_v45, %v149_v44 }
 0x14f   :  { %v302_v49 = vpop.eup %301  ;;  %v162_v50 = vmul.f32 %v159_v47, %v150_v46 }
 0x150   :  { %v164_v51 = vadd.f32 %v161_v48, %v43_v26  ;;  %v160_v53 = vadd.f32 1.0, %v302_v49 }
 0x151   :  { %v165_v54 = vadd.f32 %v162_v50, %v44_v27 }
 0x152   :  { %167 = vst [vmem:[#allocation7] sm:$0xff] %v164_v51  ;;  %v163_v55 = vmul.f32 %v160_v53, %v151_v52 }
 0x153   :  { %168 = vst [vmem:[#allocation7 + $0x8] sm:$0xff] %v165_v54 }
 0x154   :  { %v166_v56 = vadd.f32 %v163_v55, %v45_v28 }
 0x156   :  { %169 = vst [vmem:[#allocation7 + $0x10] sm:$0xff] %v166_v56 }
 0x157   :  { %358 = shalt.err (!%p355_p6)
}
 0x158   :  { %s359_s15 = scalar_lea.hbm %s457_s3, 384 }
 0x159   :  { %p360_p7 = scmp.ne.s32.totalorder %s457_s3, %s359_s15  ;;  %p363_p8 = scmp.lt.u32.totalorder %s359_s15, %s457_s3 }
 0x15b   :  { %p365_p9 = pnand %p363_p8, %p360_p7 }
 0x15d   :  { %368 = shalt.err (!%p365_p9)
}
 0x15e   :  { %181 = dma.vmem_to_hbm [thread:$0]  %s176_s11, 384, %s457_s3, [#allocation4], %s376_s22, %s376_s22, %s377_s23  }
 0x15f   :  { %373 = dma.done.wait [#allocation4], 384  }
 0x160   :  { %374 = vsyncadd [#allocation4], 4294966912 }
 0x161   :  { %185 = vsyncpa [#allocation3], 1 }
 0x162   :  { %186 = vsyncpa [#allocation6], 1 }
 0x163   :  { %187 = vsyncpa [#allocation4], 1 }

</bundles_post_ra>
